<compile_context>
chip_gen: v7x
topology: tpu7x:2x2x1
jax: 0.10.0
libtpu: 0.0.40
codegen_flags: <defaults>
</compile_context>

<pallas_src>
import functools

import jax
import jax.numpy as jnp
from jax.experimental import pallas as pl
from jax.experimental.pallas import tpu as pltpu


# ---------------------------------------------------------------------------
# helpers
# ---------------------------------------------------------------------------
def _round_up(x, m):
    return ((x + m - 1) // m) * m


def _sublane_granule(dtype):
    # f32 -> 8 sublanes, bf16/f16 -> 16, int8/fp8 -> 32
    return max(8, 32 // jnp.dtype(dtype).itemsize)


def _pick_tile_n(n, c, dtype):
    """Largest row tile whose double-buffered logits blocks stay ~<= 8 MiB."""
    itemsize = jnp.dtype(dtype).itemsize
    granule = _sublane_granule(dtype)
    budget = 8 * 1024 * 1024  # bytes for 2x (TILE_N, C) logits buffers
    tile_n = 2048
    while tile_n > granule and 2 * tile_n * c * itemsize > budget:
        tile_n //= 2
    tile_n = max(granule, min(tile_n, _round_up(n, granule)))
    return tile_n


# ---------------------------------------------------------------------------
# kernel bodies
# ---------------------------------------------------------------------------
def _focal_block(logits, targets, alpha, gamma):
    """Per-block focal loss. Returns (TILE_N, 1) float32 (unmasked)."""
    x = logits.astype(jnp.float32)    # (TN, C)  cast in-kernel (native dtype on HBM)
    a = alpha.astype(jnp.float32)     # (1, C)
    t = targets                       # (TN, 1) int32

    # numerically stable log-softmax over the class (lane) axis
    m = jnp.max(x, axis=-1, keepdims=True)
    z = x - m
    lse = jnp.log(jnp.sum(jnp.exp(z), axis=-1, keepdims=True))
    logp = z - lse                                              # (TN, C)

    # fused gather of alpha[target] * logp[target] via a one-hot mask:
    # one (TN, C) multiply + one cross-lane reduce instead of two of each.
    cls_ids = jax.lax.broadcasted_iota(jnp.int32, x.shape, 1)   # (TN, C)
    onehot = (cls_ids == t).astype(jnp.float32)                 # (TN, C)
    ce = -jnp.sum(onehot * (a * logp), axis=-1, keepdims=True)  # (TN, 1)

    # focal modulation
    pt = jnp.exp(-ce)
    one_minus_pt = 1.0 - pt
    g_int = int(gamma)
    if float(g_int) == float(gamma) and g_int >= 0:
        # integer gamma (default 2.0): repeated VPU multiplies, no EUP pow
        mod = jnp.ones_like(ce)
        for _ in range(g_int):
            mod = mod * one_minus_pt
    else:
        mod = one_minus_pt ** gamma
    return mod * ce


def _focal_loss_reduce_kernel(logits_ref, targets_ref, alpha_ref, out_ref,
                              acc_ref, *, gamma, n, tile_n, scale):
    i = pl.program_id(0)

    @pl.when(i == 0)
    def _init():
        acc_ref[...] = jnp.zeros_like(acc_ref)

    focal = _focal_block(logits_ref[...], targets_ref[...], alpha_ref[...], gamma)

    # mask out rows that only exist because of padding to a multiple of tile_n
    row_ids = i * tile_n + jax.lax.broadcasted_iota(jnp.int32, focal.shape, 0)
    focal = jnp.where(row_ids < n, focal, 0.0)

    acc_ref[...] += jnp.sum(focal, axis=0, keepdims=True)

    @pl.when(i == pl.num_programs(0) - 1)
    def _finalize():
        out_ref[...] = acc_ref[...] * scale


def _focal_loss_none_kernel(logits_ref, targets_ref, alpha_ref, out_ref, *, gamma):
    out_ref[...] = _focal_block(logits_ref[...], targets_ref[...],
                                alpha_ref[...], gamma)


# ---------------------------------------------------------------------------
# wrapper
# ---------------------------------------------------------------------------
def focal_loss(logits, targets, alpha=None, *, gamma=2.0, reduction="mean",
               tile_n=None):
    """Pallas FocalLoss forward.

    logits:  [N, C] float (f32 / bf16 / f16 — kept in native dtype on HBM)
    targets: [N]    int class indices
    alpha:   [C]    float per-class CE weight (None -> ones, i.e. unweighted)
    """
    if logits.ndim != 2:
        raise ValueError("logits must be [N, C]")
    n, c = logits.shape
    if alpha is None:
        alpha = jnp.ones((c,), jnp.float32)
    alpha_2d = jnp.asarray(alpha, jnp.float32).reshape(1, c)
    targets_2d = targets.reshape(n, 1).astype(jnp.int32)

    granule = _sublane_granule(logits.dtype)
    if tile_n is None:
        tile_n = _pick_tile_n(n, c, logits.dtype)
    else:
        tile_n = max(granule, _round_up(int(tile_n), granule))
    n_pad = _round_up(n, tile_n)
    num_blocks = n_pad // tile_n

    if n_pad != n:
        logits = jnp.pad(logits, ((0, n_pad - n), (0, 0)))
        targets_2d = jnp.pad(targets_2d, ((0, n_pad - n), (0, 0)))

    in_specs = [
        pl.BlockSpec((tile_n, c), lambda i: (i, 0)),   # logits: streamed over N
        pl.BlockSpec((tile_n, 1), lambda i: (i, 0)),   # targets: small side stream
        pl.BlockSpec((1, c), lambda i: (0, 0)),        # alpha: resident in VMEM
    ]

    itemsize = jnp.dtype(logits.dtype).itemsize
    out_bytes = 4 if reduction in ("mean", "sum") else 4 * n_pad
    cost = pl.CostEstimate(
        flops=int(10 * n_pad * c),
        transcendentals=int(n_pad * (c + 3)),
        bytes_accessed=int(n_pad * c * itemsize + 4 * n_pad + 4 * c + out_bytes),
    )
    vmem_limit = 32 * 1024 * 1024

    if reduction in ("mean", "sum"):
        scale = (1.0 / n) if reduction == "mean" else 1.0
        kernel = functools.partial(_focal_loss_reduce_kernel, gamma=gamma,
                                   n=n, tile_n=tile_n, scale=scale)
        out = pl.pallas_call(
            kernel,
            grid=(num_blocks,),
            in_specs=in_specs,
            out_specs=pl.BlockSpec((1, 1), lambda i: (0, 0)),
            out_shape=jax.ShapeDtypeStruct((1, 1), jnp.float32),
            scratch_shapes=[pltpu.VMEM((1, 1), jnp.float32)],
            compiler_params=pltpu.CompilerParams(
                dimension_semantics=("arbitrary",),
                vmem_limit_bytes=vmem_limit),
            cost_estimate=cost,
        )(logits, targets_2d, alpha_2d)
        return out[0, 0]

    if reduction == "none":
        kernel = functools.partial(_focal_loss_none_kernel, gamma=gamma)
        out = pl.pallas_call(
            kernel,
            grid=(num_blocks,),
            in_specs=in_specs,
            out_specs=pl.BlockSpec((tile_n, 1), lambda i: (i, 0)),
            out_shape=jax.ShapeDtypeStruct((n_pad, 1), jnp.float32),
            compiler_params=pltpu.CompilerParams(
                dimension_semantics=("parallel",),
                vmem_limit_bytes=vmem_limit),
            cost_estimate=cost,
        )(logits, targets_2d, alpha_2d)
        return out[:n, 0]

    raise ValueError(f"unknown reduction: {reduction!r}")


# ---------------------------------------------------------------------------
# pure-JAX reference (mirrors torch F.cross_entropy(weight=..) + focal)
# ---------------------------------------------------------------------------
def focal_loss_ref(logits, targets, alpha, *, gamma=2.0, reduction="mean"):
    logp = jax.nn.log_softmax(logits.astype(jnp.float32), axis=-1)
    logp_t = jnp.take_along_axis(logp, targets[:, None], axis=-1)[:, 0]
    w_t = jnp.asarray(alpha, jnp.float32)[targets]
    ce = -w_t * logp_t
    pt = jnp.exp(-ce)
    focal = (1.0 - pt) ** gamma * ce
    if reduction == "mean":
        return focal.mean()
    if reduction == "sum":
        return focal.sum()
    return focal


if __name__ == "__main__":
    key = jax.random.PRNGKey(0)
    k1, k2, k3, k4 = jax.random.split(key, 4)

    # Case 1: module defaults (reduction='mean'), small single-tile shapes.
    N1, C1 = 16, 8
    logits1 = jax.random.normal(k1, (N1, C1), dtype=jnp.float32)
    targets1 = jax.random.randint(k2, (N1,), 0, C1, dtype=jnp.int32)
    alpha1 = jnp.linspace(0.5, 1.5, C1, dtype=jnp.float32)
    out1 = jax.block_until_ready(
        focal_loss(logits1, targets1, alpha1, gamma=2.0, reduction="mean"))
    ref1 = focal_loss_ref(logits1, targets1, alpha1, gamma=2.0, reduction="mean")
    assert jnp.allclose(out1, ref1, atol=1e-5, rtol=1e-5), (out1, ref1)

    # Case 2: multi-block grid with a ragged (masked) final tile.
    N2, C2 = 200, 32
    logits2 = jax.random.normal(k3, (N2, C2), dtype=jnp.float32)
    targets2 = jax.random.randint(k4, (N2,), 0, C2, dtype=jnp.int32)
    alpha2 = jnp.linspace(0.25, 2.0, C2, dtype=jnp.float32)

    out_sum = jax.block_until_ready(
        focal_loss(logits2, targets2, alpha2, gamma=2.0, reduction="sum", tile_n=64))
    ref_sum = focal_loss_ref(logits2, targets2, alpha2, gamma=2.0, reduction="sum")
    assert jnp.allclose(out_sum, ref_sum, atol=1e-4, rtol=1e-5), (out_sum, ref_sum)

    out_none = jax.block_until_ready(
        focal_loss(logits2, targets2, alpha2, gamma=2.0, reduction="none", tile_n=64))
    ref_none = focal_loss_ref(logits2, targets2, alpha2, gamma=2.0, reduction="none")
    assert jnp.allclose(out_none, ref_none, atol=1e-5, rtol=1e-5)

    # Case 3: native bf16 logits (cast to f32 inside the kernel), alpha=None.
    N3, C3 = 128, 32
    logits3 = jax.random.normal(k1, (N3, C3), dtype=jnp.float32).astype(jnp.bfloat16)
    targets3 = jax.random.randint(k2, (N3,), 0, C3, dtype=jnp.int32)
    out_bf = jax.block_until_ready(
        focal_loss(logits3, targets3, None, gamma=2.0, reduction="mean"))
    ref_bf = focal_loss_ref(logits3.astype(jnp.float32), targets3,
                            jnp.ones((C3,), jnp.float32), gamma=2.0, reduction="mean")
    assert jnp.allclose(out_bf, ref_bf, atol=1e-5, rtol=1e-5), (out_bf, ref_bf)

    print("KERNEL_OK")
</pallas_src>

<mosaic_0001>
module attributes {stable_mosaic.version = 11 : i64} {
  func.func @_focal_loss_reduce_kernel(%arg0: i32, %arg1: memref<16x8xf32, #tpu.memory_space<vmem>>, %arg2: memref<16x1xi32, #tpu.memory_space<vmem>>, %arg3: memref<1x8xf32, #tpu.memory_space<vmem>>, %arg4: memref<1x1xf32, #tpu.memory_space<vmem>>, %arg5: memref<1x1xf32, #tpu.memory_space<vmem>>) attributes {dimension_semantics = [#tpu.dimension_semantics<arbitrary>], iteration_bounds = array<i64: 1>, scalar_prefetch = 0 : i64, scratch_operands = 1 : i64, tpu.core_type = #tpu.core_type<tc>, window_params = [{transform_indices = @transform_0, window_bounds = array<i64: 16, 8>}, {transform_indices = @transform_1, window_bounds = array<i64: 16, 1>}, {pipeline_mode = #tpu.pipeline_mode<synchronous>, transform_indices = @transform_2, window_bounds = array<i64: 1, 8>}, {pipeline_mode = #tpu.pipeline_mode<synchronous>, transform_indices = @transform_3, window_bounds = array<i64: 1, 1>}]} {
    %c0_i32 = arith.constant 0 : i32
    %0 = arith.cmpi eq, %arg0, %c0_i32 : i32
    %1 = arith.extui %0 : i1 to i32
    %c0_i32_0 = arith.constant 0 : i32
    %2 = arith.cmpi ne, %1, %c0_i32_0 : i32
    scf.if %2 {
      %cst_21 = arith.constant 0.000000e+00 : f32
      %53 = vector.broadcast %cst_21 : f32 to vector<1x1xf32>
      %c0_22 = arith.constant 0 : index
      %c0_23 = arith.constant 0 : index
      %54 = vector.load %arg5[%c0_22, %c0_23] : memref<1x1xf32, #tpu.memory_space<vmem>>, vector<1x1xf32>
      tpu.vector_store %arg5[%c0_22, %c0_23], %53 {strides = array<i32>} : memref<1x1xf32, #tpu.memory_space<vmem>>, vector<1x1xf32>,
    } else {
    }
    %c0 = arith.constant 0 : index
    %c0_1 = arith.constant 0 : index
    %3 = vector.load %arg1[%c0, %c0_1] : memref<16x8xf32, #tpu.memory_space<vmem>>, vector<16x8xf32>
    %c0_2 = arith.constant 0 : index
    %c0_3 = arith.constant 0 : index
    %4 = vector.load %arg2[%c0_2, %c0_3] : memref<16x1xi32, #tpu.memory_space<vmem>>, vector<16x1xi32>
    %c0_4 = arith.constant 0 : index
    %c0_5 = arith.constant 0 : index
    %5 = vector.load %arg3[%c0_4, %c0_5] : memref<1x8xf32, #tpu.memory_space<vmem>>, vector<1x8xf32>
    %cst = arith.constant dense<0xFF800000> : vector<16xf32>
    %6 = vector.multi_reduction <maximumf>, %3, %cst [1] : vector<16x8xf32> to vector<16xf32>
    %7 = vector.shape_cast %6 : vector<16xf32> to vector<16x1xf32>
    %8 = vector.broadcast %7 : vector<16x1xf32> to vector<16x8xf32>
    %9 = arith.subf %3, %8 : vector<16x8xf32>
    %10 = math.exp %9 : vector<16x8xf32>
    %cst_6 = arith.constant dense<0.000000e+00> : vector<16xf32>
    %11 = vector.multi_reduction <add>, %10, %cst_6 [1] : vector<16x8xf32> to vector<16xf32>
    %12 = vector.shape_cast %11 : vector<16xf32> to vector<16x1xf32>
    %13 = math.log %12 : vector<16x1xf32>
    %14 = vector.broadcast %13 : vector<16x1xf32> to vector<16x8xf32>
    %15 = arith.subf %9, %14 : vector<16x8xf32>
    %16 = tpu.iota {dimensions = array<i32: 1>} : vector<16x8xi32>
    %17 = vector.broadcast %4 : vector<16x1xi32> to vector<16x8xi32>
    %18 = arith.cmpi eq, %16, %17 : vector<16x8xi32>
    %19 = arith.extui %18 : vector<16x8xi1> to vector<16x8xi32>
    %20 = arith.sitofp %19 : vector<16x8xi32> to vector<16x8xf32>
    %21 = vector.broadcast %5 : vector<1x8xf32> to vector<16x8xf32>
    %22 = arith.mulf %21, %15 : vector<16x8xf32>
    %23 = arith.mulf %20, %22 : vector<16x8xf32>
    %cst_7 = arith.constant dense<0.000000e+00> : vector<16xf32>
    %24 = vector.multi_reduction <add>, %23, %cst_7 [1] : vector<16x8xf32> to vector<16xf32>
    %25 = vector.shape_cast %24 : vector<16xf32> to vector<16x1xf32>
    %cst_8 = arith.constant 0.000000e+00 : f32
    %26 = vector.broadcast %cst_8 : f32 to vector<16x1xf32>
    %27 = arith.subf %26, %25 : vector<16x1xf32>
    %cst_9 = arith.constant 0.000000e+00 : f32
    %28 = vector.broadcast %cst_9 : f32 to vector<16x1xf32>
    %29 = arith.subf %28, %27 : vector<16x1xf32>
    %30 = math.exp %29 : vector<16x1xf32>
    %cst_10 = arith.constant 1.000000e+00 : f32
    %31 = vector.broadcast %cst_10 : f32 to vector<16x1xf32>
    %32 = arith.subf %31, %30 : vector<16x1xf32>
    %cst_11 = arith.constant 1.000000e+00 : f32
    %33 = vector.broadcast %cst_11 : f32 to vector<16x1xf32>
    %34 = arith.mulf %33, %32 : vector<16x1xf32>
    %35 = arith.mulf %34, %32 : vector<16x1xf32>
    %36 = arith.mulf %35, %27 : vector<16x1xf32>
    %c16_i32 = arith.constant 16 : i32
    %37 = arith.muli %arg0, %c16_i32 : i32
    %38 = tpu.iota {dimensions = array<i32: 0>} : vector<16x1xi32>
    %39 = vector.broadcast %37 : i32 to vector<16x1xi32>
    %40 = arith.addi %39, %38 : vector<16x1xi32>
    %c16_i32_12 = arith.constant 16 : i32
    %41 = vector.broadcast %c16_i32_12 : i32 to vector<16x1xi32>
    %42 = arith.cmpi slt, %40, %41 : vector<16x1xi32>
    %cst_13 = arith.constant 0.000000e+00 : f32
    %43 = vector.broadcast %cst_13 : f32 to vector<16x1xf32>
    %44 = arith.select %42, %36, %43 : vector<16x1xi1>, vector<16x1xf32>
    %c0_14 = arith.constant 0 : index
    %c0_15 = arith.constant 0 : index
    %45 = vector.load %arg5[%c0_14, %c0_15] : memref<1x1xf32, #tpu.memory_space<vmem>>, vector<1x1xf32>
    %cst_16 = arith.constant dense<0.000000e+00> : vector<1xf32>
    %46 = vector.multi_reduction <add>, %44, %cst_16 [0] : vector<16x1xf32> to vector<1xf32>
    %47 = vector.shape_cast %46 : vector<1xf32> to vector<1x1xf32>
    %48 = arith.addf %45, %47 : vector<1x1xf32>
    %c0_17 = arith.constant 0 : index
    %c0_18 = arith.constant 0 : index
    %49 = vector.load %arg5[%c0_17, %c0_18] : memref<1x1xf32, #tpu.memory_space<vmem>>, vector<1x1xf32>
    tpu.vector_store %arg5[%c0_17, %c0_18], %48 {strides = array<i32>} : memref<1x1xf32, #tpu.memory_space<vmem>>, vector<1x1xf32>,
    %c0_i32_19 = arith.constant 0 : i32
    %50 = arith.cmpi eq, %arg0, %c0_i32_19 : i32
    %51 = arith.extui %50 : i1 to i32
    %c0_i32_20 = arith.constant 0 : i32
    %52 = arith.cmpi ne, %51, %c0_i32_20 : i32
    scf.if %52 {
      %c0_21 = arith.constant 0 : index
      %c0_22 = arith.constant 0 : index
      %53 = vector.load %arg5[%c0_21, %c0_22] : memref<1x1xf32, #tpu.memory_space<vmem>>, vector<1x1xf32>
      %cst_23 = arith.constant 6.250000e-02 : f32
      %54 = vector.broadcast %cst_23 : f32 to vector<1x1xf32>
      %55 = arith.mulf %53, %54 : vector<1x1xf32>
      %c0_24 = arith.constant 0 : index
      %c0_25 = arith.constant 0 : index
      %56 = vector.load %arg4[%c0_24, %c0_25] : memref<1x1xf32, #tpu.memory_space<vmem>>, vector<1x1xf32>
      tpu.vector_store %arg4[%c0_24, %c0_25], %55 {strides = array<i32>} : memref<1x1xf32, #tpu.memory_space<vmem>>, vector<1x1xf32>,
    } else {
    }
    return
  }
  func.func @transform_0(%arg0: i32) -> (i32, i32) {
    %c0_i32 = arith.constant 0 : i32
    %c0_i32_0 = arith.constant 0 : i32
    return %arg0, %c0_i32 : i32, i32
  }
  func.func @transform_1(%arg0: i32) -> (i32, i32) {
    %c0_i32 = arith.constant 0 : i32
    %c0_i32_0 = arith.constant 0 : i32
    return %arg0, %c0_i32 : i32, i32
  }
  func.func @transform_2(%arg0: i32) -> (i32, i32) {
    %c0_i32 = arith.constant 0 : i32
    %c0_i32_0 = arith.constant 0 : i32
    %c0_i32_1 = arith.constant 0 : i32
    return %c0_i32, %c0_i32_0 : i32, i32
  }
  func.func @transform_3(%arg0: i32) -> (i32, i32) {
    %c0_i32 = arith.constant 0 : i32
    %c0_i32_0 = arith.constant 0 : i32
    %c0_i32_1 = arith.constant 0 : i32
    return %c0_i32, %c0_i32_0 : i32, i32
  }
}

</mosaic_0001>

<bundles_post_ra>
// kernel: tpu_custom_call.1
= control target key start
LH: loop header
LB: loop body
LE: loop exit
PB: predicated region body
PF: predicated region fallthrough
CT: control target
= control target key end

     0   :  { %vm26_vm0 = vcmask 64512   ;;  %s240_s0 = inlined_call_operand.vmem [shape: f32[16,8], index: 0, kind: input, shape index: {}]   ;;  %s241_s1 = inlined_call_operand.vmem [shape: s32[16,1], index: 1, kind: input, shape index: {}]   ;;  %s242_s2 = inlined_call_operand.vmem [shape: f32[1,8], index: 2, kind: input, shape index: {}]   ;;  %s243_s3 = inlined_call_operand.hbm [shape: f32[1,1], index: 3, kind: output, shape index: {}]  }
   0x1   :  { %v21_v0 = vld [vmem:[%s240_s0] sm:$0xff]  ;;  %v22_v1 = vld [vmem:[%s240_s0 + $0x8] sm:$0xff] }
   0x2   :  { %8 = vsyncpa [#allocation4], 0  ;;  %v27_v2 = vsel %vm26_vm0, %v21_v0, -inf  ;;  %v30_v3 = vsel %vm26_vm0, %v22_v1, -inf  ;;  %v23_v4 = vld [vmem:[%s241_s1] sm:$0xff]  ;;  %v181_v5 = vmov 0   ;;  %v51_v19 = vlaneseq }
   0x3   :  { %28 = vmax.xlane.f32.xlu0 %v27_v2  ;;  %144 = vset.pattern.permute.xlu1 %v181_v5  ;;  %v24_v16 = vld [vmem:[%s241_s1 + $0x8] sm:$0xff]  ;;  %v139_v25 = vld [vmem:[%s242_s2] ss:$0 sm:$0xff]  ;;  %v182_v28 = vmov 0.0   ;;  %vm19_vm3 = vcmask 0   ;;  %s183_s1 = smov [#allocation3]  }
   0x4   :  { %143 = vset.pattern.permute.xlu0 %v181_v5  ;;  %v52_v20 = vand.u32 127, %v51_v19  ;;  %20 = vst.msk [vmem:[#allocation2] sm:$0x1] %vm19_vm3, %v182_v28  ;;  %s129_s2 = sshll.u32 %s183_s1, 4  ;;  %s130_s2 = int_to_ptr.vmem [resolvable:$true] %s129_s2 }
   0x5   :  { %s157_s21 = scalar_lea.vmem %s130_s2, 16  ;;  %s161_s22 = scalar_lea.vmem %s130_s2, 32 }
   0x6   :  { %p158_p0 = scmp.ne.s32.totalorder %s130_s2, %s157_s21  ;;  %p162_p1 = scmp.lt.s32.totalorder %s130_s2, %s130_s2 }
   0x7   :  { %31 = vmax.xlane.f32.xlu0 %v30_v3  ;;  %p163_p2 = scmp.lt.s32.totalorder %s161_s22, %s157_s21 }
   0x9   :  { %p164_p3 = por %p163_p2, %p162_p1 }
   0xb   :  { %v106_v61 = vld [vmem:[#allocation2] sm:$0x1]  ;;  %p165_p4 = pnand %p164_p3, %p158_p0 }
  0x1d   :  { %54 = vperm.xlu0 %143, %v23_v4  }
  0x90   :  { %v29_v6 = vpop.xlane.xlu0 %28 }
  0x91   :  { %v33_v7 = vsub.f32 %v21_v0, %v29_v6 }
  0x93   :  { %v35_v8 = vmul.f32 1.442695, %v33_v7 }
  0x94   :  { %v32_v9 = vpop.xlane.xlu0 %31 }
  0x95   :  { %145 = vpow2.f32 %v35_v8  ;;  %v34_v10 = vsub.f32 %v22_v1, %v32_v9 }
  0x97   :  { %v37_v11 = vmul.f32 1.442695, %v34_v10 }
  0x99   :  { %147 = vpow2.f32 %v37_v11 }
  0x9c   :  { %v55_v21 = vpop.permute.xlu0 %54 }
  0x9d   :  { %vm59_vm1 = vcmp.eq.s32.totalorder %v52_v20, %v55_v21 }
  0x9e   :  { %v137_v29 = vsel %vm59_vm1, 1.0, %v182_v28 }
  0x9f   :  { %v146_v12 = vpop.eup %145 }
  0xa0   :  { %v39_v13 = vsel %vm26_vm0, %v146_v12, 0.0 }
  0xa1   :  { %40 = vadd.xlane.f32.xlu1 %v39_v13 }
  0xa3   :  { %v148_v14 = vpop.eup %147 }
  0xa4   :  { %v42_v15 = vsel %vm26_vm0, %v148_v14, 0.0 }
  0xa5   :  { %43 = vadd.xlane.f32.xlu1 %v42_v15 }
  0xb6   :  { %57 = vperm.xlu1 %144, %v24_v16  }
 0x12e   :  { %v41_v17 = vpop.xlane.xlu1 %40 }
 0x12f   :  { %149 = vlog2.f32 %v41_v17 }
 0x132   :  { %v44_v18 = vpop.xlane.xlu1 %43 }
 0x133   :  { %151 = vlog2.f32 %v44_v18 }
 0x136   :  { %v58_v24 = vpop.permute.xlu1 %57 }
 0x137   :  { %vm60_vm2 = vcmp.eq.s32.totalorder %v52_v20, %v58_v24 }
 0x138   :  { %v138_v34 = vsel %vm60_vm2, 1.0, %v182_v28 }
 0x139   :  { %v150_v22 = vpop.eup %149 }
 0x13a   :  { %v46_v23 = vmul.f32 0.6931472, %v150_v22 }
 0x13c   :  { %v49_v26 = vsub.f32 %v33_v7, %v46_v23 }
 0x13d   :  { %v152_v27 = vpop.eup %151 }
 0x13e   :  { %v48_v30 = vmul.f32 0.6931472, %v152_v27  ;;  %v71_v31 = vmul.f32 %v139_v25, %v49_v26 }
 0x140   :  { %v50_v32 = vsub.f32 %v34_v10, %v48_v30  ;;  %v73_v33 = vmul.f32 %v137_v29, %v71_v31 }
 0x142   :  { %v75_v35 = vsel %vm26_vm0, %v73_v33, 0.0  ;;  %v72_v36 = vmul.f32 %v139_v25, %v50_v32 }
 0x143   :  { %76 = vadd.xlane.f32.xlu1 %v75_v35 }
 0x144   :  { %v74_v37 = vmul.f32 %v138_v34, %v72_v36 }
 0x146   :  { %v78_v38 = vsel %vm26_vm0, %v74_v37, 0.0 }
 0x147   :  { %79 = vadd.xlane.f32.xlu0 %v78_v38 }
 0x1d0   :  { %v77_v39 = vpop.xlane.xlu1 %76 }
 0x1d1   :  { %v81_v40 = vsub.f32 0.0, %v77_v39 }
 0x1d3   :  { %v83_v41 = vsub.f32 0.0, %v81_v40 }
 0x1d4   :  { %v80_v42 = vpop.xlane.xlu0 %79 }
 0x1d5   :  { %v85_v43 = vmul.f32 1.442695, %v83_v41  ;;  %v82_v44 = vsub.f32 0.0, %v80_v42 }
 0x1d7   :  { %153 = vpow2.f32 %v85_v43  ;;  %v84_v45 = vsub.f32 0.0, %v82_v44 }
 0x1d9   :  { %v87_v46 = vmul.f32 1.442695, %v84_v45 }
 0x1db   :  { %155 = vpow2.f32 %v87_v46 }
 0x1e1   :  { %v154_v47 = vpop.eup %153 }
 0x1e2   :  { %v89_v48 = vsub.f32 1.0, %v154_v47 }
 0x1e4   :  { %v91_v50 = vmul.f32 %v89_v48, %v89_v48 }
 0x1e5   :  { %v156_v49 = vpop.eup %155 }
 0x1e6   :  { %v90_v51 = vsub.f32 1.0, %v156_v49  ;;  %v93_v53 = vmul.f32 %v91_v50, %v81_v40 }
 0x1e8   :  { %v92_v52 = vmul.f32 %v90_v51, %v90_v51 }
 0x1ea   :  { %v94_v54 = vmul.f32 %v92_v52, %v82_v44 }
 0x1ec   :  { %v107_v55 = vadd.f32 %v94_v54, %v93_v53 }
 0x1ee   :  { %v108_v56 = vrot.slane %v107_v55, 4 }
 0x1f0   :  { %v109_v57 = vadd.f32 %v108_v56, %v107_v55 }
 0x1f2   :  { %v110_v58 = vrot.slane %v109_v57, 2 }
 0x1f4   :  { %v111_v59 = vadd.f32 %v110_v58, %v109_v57 }
 0x1f6   :  { %v112_v60 = vrot.slane %v111_v59, 1 }
 0x1f8   :  { %v113_v62 = vadd.f32 %v112_v60, %v111_v59 }
 0x1fa   :  { %v114_v63 = vadd.f32 %v113_v62, %v106_v61 }
 0x1fc   :  { %116 = vst.msk [vmem:[#allocation2] sm:$0x1] %vm19_vm3, %v114_v63 }
 0x203   :  { %v120_v0 = vld [vmem:[#allocation2] sm:$0x1] }
 0x204   :  { %v121_v1 = vmul.f32 0.0625, %v120_v0 }
 0x206   :  { %122 = vst.msk [vmem:[#allocation3] sm:$0x1] %vm19_vm3, %v121_v1 }
 0x207   :  { %168 = shalt.err (!%p165_p4)
}
 0x208   :  { %s169_s25 = scalar_lea.hbm %s243_s3, 16 }
 0x209   :  { %p170_p5 = scmp.ne.s32.totalorder %s243_s3, %s169_s25  ;;  %p173_p6 = scmp.lt.u32.totalorder %s169_s25, %s243_s3 }
 0x20b   :  { %p175_p7 = pnand %p173_p6, %p170_p5 }
 0x20d   :  { %178 = shalt.err (!%p175_p7)
}
 0x20e   :  { %132 = dma.vmem_to_hbm [thread:$0]  %s130_s2, 16, %s243_s3, [#allocation4]  }
 0x20f   :  { %179 = dma.done.wait [#allocation4], 16  }
 0x210   :  { %180 = vsyncadd [#allocation4], 4294967280 }
 0x211   :  { %136 = vsyncpa [#allocation4], 1 }

</bundles_post_ra>
